<compile_context>
chip_gen: v5e
topology: v5e:2x2
jax: 0.10.0
libtpu: 0.0.40
codegen_flags: <defaults>
</compile_context>

<pallas_src>
import functools

import jax
import jax.numpy as jnp
from jax.experimental import pallas as pl
from jax.experimental.pallas import tpu as pltpu

BN_EPS = 1e-5                     # cfg.BN.EPS default in pycls
COMPUTE_DTYPE = jnp.bfloat16      # MXU inputs / HBM intermediates
VMEM_LIMIT = 48 * 1024 * 1024     # keeps headroom on v7x's 64 MiB physical VMEM


# ---------------------------------------------------------------------------
# Row tiling helpers
# ---------------------------------------------------------------------------
def _round_up(x, m):
    return (x + m - 1) // m * m


def _pick_row_tile(m, row_bytes, max_tile=512, vmem_budget=24 << 20):
    """Row tile: multiple of 8, VMEM-bounded, >=2 grid tiles when possible."""
    tm = max_tile
    # keep the double-buffered row-streamed traffic well inside scoped VMEM
    while tm > 16 and 2 * tm * row_bytes > vmem_budget:
        tm //= 2
    if m < 2 * tm:  # give both v7x TensorCores a tile when we can
        tm = max(8, _round_up(pl.cdiv(m, 2), 8))
    return tm


# ---------------------------------------------------------------------------
# Pallas kernels
# ---------------------------------------------------------------------------
def _mm_bias_act_kernel(x_ref, w_ref, b_ref, o_ref, *, relu):
    """out = relu?(x @ w + bias); BN scale is pre-folded into w."""
    acc = jnp.dot(x_ref[...], w_ref[...], preferred_element_type=jnp.float32)
    out = acc + b_ref[...]
    if relu:
        out = jnp.maximum(out, 0.0)
    o_ref[...] = out.astype(o_ref.dtype)


def _fused_tail_kernel(p_ref, wb_ref, bb_ref, wc_ref, bc_ref, xs_ref, *rest,
                       num_gs, cg, proj):
    """grouped 3x3 (+BN+ReLU) -> 1x1 (+BN) -> (+proj 1x1+BN) residual -> ReLU."""
    if proj:
        wp_ref, bp_ref, o_ref = rest
    else:
        (o_ref,) = rest

    kg = 9 * cg
    # grouped 3x3 conv: per-group matmul on the im2col patch columns,
    # concatenated in-register into a lane-dense (tm, w_b) tile.
    group_outs = []
    for g in range(num_gs):
        xg = p_ref[:, g * kg:(g + 1) * kg]                       # (tm, 9*cg)
        group_outs.append(
            jnp.dot(xg, wb_ref[g], preferred_element_type=jnp.float32))
    b_acc = group_outs[0] if num_gs == 1 else jnp.concatenate(group_outs, axis=-1)
    b_act = jnp.maximum(b_acc + bb_ref[...], 0.0)                # BN + ReLU

    # 1x1 conv c + BN
    c_out = jnp.dot(b_act.astype(wc_ref.dtype), wc_ref[...],
                    preferred_element_type=jnp.float32) + bc_ref[...]

    # skip path: projection 1x1 + BN, or identity
    if proj:
        skip = jnp.dot(xs_ref[...], wp_ref[...],
                       preferred_element_type=jnp.float32) + bp_ref[...]
    else:
        skip = xs_ref[...].astype(jnp.float32)

    o_ref[...] = jnp.maximum(c_out + skip, 0.0).astype(o_ref.dtype)


# ---------------------------------------------------------------------------
# pallas_call wrappers
# ---------------------------------------------------------------------------
def conv1x1_bn_act(x, w, bias, *, relu, out_dtype):
    """Fused x @ w + bias (+ ReLU), row-tiled; ragged M handled by padding."""
    m, k = x.shape
    n = w.shape[1]
    row_bytes = 2 * k + jnp.dtype(out_dtype).itemsize * n
    tm = _pick_row_tile(m, row_bytes)
    m_pad = _round_up(m, tm)
    if m_pad != m:
        x = jnp.pad(x, ((0, m_pad - m), (0, 0)))

    out = pl.pallas_call(
        functools.partial(_mm_bias_act_kernel, relu=relu),
        out_shape=jax.ShapeDtypeStruct((m_pad, n), out_dtype),
        grid=(m_pad // tm,),
        in_specs=[
            pl.BlockSpec((tm, k), lambda i: (i, 0)),
            pl.BlockSpec((k, n), lambda i: (0, 0)),
            pl.BlockSpec((1, n), lambda i: (0, 0)),
        ],
        out_specs=pl.BlockSpec((tm, n), lambda i: (i, 0)),
        compiler_params=pltpu.CompilerParams(
            dimension_semantics=("parallel",),
            vmem_limit_bytes=VMEM_LIMIT),
    )(x, w, bias.reshape(1, n))
    return out[:m]


def fused_tail(patches, wb, bias_b, wc, bias_c, x_s, wp=None, bias_p=None, *,
               num_gs, cg, out_dtype=jnp.float32):
    """Grouped 3x3 + BN + ReLU, 1x1 + BN, (proj 1x1 + BN), residual add, ReLU."""
    m, kb = patches.shape
    w_b = wb.shape[0] * wb.shape[2]
    w_out = wc.shape[1]
    c_s = x_s.shape[1]
    proj = wp is not None

    row_bytes = 2 * (kb + c_s) + jnp.dtype(out_dtype).itemsize * w_out
    tm = _pick_row_tile(m, row_bytes)
    m_pad = _round_up(m, tm)
    if m_pad != m:
        patches = jnp.pad(patches, ((0, m_pad - m), (0, 0)))
        x_s = jnp.pad(x_s, ((0, m_pad - m), (0, 0)))

    in_specs = [
        pl.BlockSpec((tm, kb), lambda i: (i, 0)),
        pl.BlockSpec(wb.shape, lambda i: (0, 0, 0)),
        pl.BlockSpec((1, w_b), lambda i: (0, 0)),
        pl.BlockSpec((w_b, w_out), lambda i: (0, 0)),
        pl.BlockSpec((1, w_out), lambda i: (0, 0)),
        pl.BlockSpec((tm, c_s), lambda i: (i, 0)),
    ]
    args = [patches, wb, bias_b.reshape(1, w_b), wc, bias_c.reshape(1, w_out), x_s]
    if proj:
        in_specs += [
            pl.BlockSpec((c_s, w_out), lambda i: (0, 0)),
            pl.BlockSpec((1, w_out), lambda i: (0, 0)),
        ]
        args += [wp, bias_p.reshape(1, w_out)]

    out = pl.pallas_call(
        functools.partial(_fused_tail_kernel, num_gs=num_gs, cg=cg, proj=proj),
        out_shape=jax.ShapeDtypeStruct((m_pad, w_out), out_dtype),
        grid=(m_pad // tm,),
        in_specs=in_specs,
        out_specs=pl.BlockSpec((tm, w_out), lambda i: (i, 0)),
        compiler_params=pltpu.CompilerParams(
            dimension_semantics=("parallel",),
            vmem_limit_bytes=VMEM_LIMIT),
    )(*args)
    return out[:m]


# ---------------------------------------------------------------------------
# Parameters (deterministic, synthetic) + BN folding
# ---------------------------------------------------------------------------
def fold_bn(gamma, beta, mean, var, eps=BN_EPS):
    scale = gamma / jnp.sqrt(var + eps)
    bias = beta - mean * scale
    return scale, bias


def init_params(key, w_in, w_out, stride, bot_mul, num_gs):
    w_b = int(round(w_out * bot_mul))
    ks = jax.random.split(key, 8)

    def conv_w(k, cout, cin, kh, kw):
        fan_in = cin * kh * kw
        return jax.random.normal(k, (cout, cin, kh, kw), jnp.float32) / jnp.sqrt(fan_in)

    def bn_p(k, c):
        k1, k2, k3, k4 = jax.random.split(k, 4)
        gamma = 1.0 + 0.1 * jax.random.normal(k1, (c,), jnp.float32)
        beta = 0.1 * jax.random.normal(k2, (c,), jnp.float32)
        mean = 0.1 * jax.random.normal(k3, (c,), jnp.float32)
        var = 1.0 + 0.1 * jax.random.uniform(k4, (c,), jnp.float32)
        return gamma, beta, mean, var

    params = dict(
        w_a=conv_w(ks[0], w_b, w_in, 1, 1),               # a: 1x1
        bn_a=bn_p(ks[1], w_b),
        w_b=conv_w(ks[2], w_b, w_b // num_gs, 3, 3),      # b: 3x3 grouped
        bn_b=bn_p(ks[3], w_b),
        w_c=conv_w(ks[4], w_out, w_b, 1, 1),              # c: 1x1
        bn_c=bn_p(ks[5], w_out),
    )
    proj_block = (w_in != w_out) or (stride != 1)
    if proj_block:
        params["w_proj"] = conv_w(ks[6], w_out, w_in, 1, 1)
        params["bn_proj"] = bn_p(ks[7], w_out)
    return params, w_b, proj_block


# ---------------------------------------------------------------------------
# ResBottleneckBlock forward (Pallas hot path, JAX glue for pad/patch/reshape)
# ---------------------------------------------------------------------------
def res_bottleneck_block(x_nhwc, params, *, stride, num_gs, proj_block, w_b):
    n, h, w, c_in = x_nhwc.shape
    h2 = (h - 1) // stride + 1
    w2 = (w - 1) // stride + 1
    w_out = params["w_c"].shape[0]
    cg = w_b // num_gs
    cdt = COMPUTE_DTYPE

    # Fold BN into the conv weights (scale) and a per-channel bias.
    sa, ba = fold_bn(*params["bn_a"])
    sb, bb = fold_bn(*params["bn_b"])
    sc, bc = fold_bn(*params["bn_c"])

    wa = (params["w_a"][:, :, 0, 0].T * sa[None, :]).astype(cdt)      # (c_in, w_b)
    wc = (params["w_c"][:, :, 0, 0].T * sc[None, :]).astype(cdt)      # (w_b, w_out)
    # grouped 3x3 weight -> (num_gs, 9*cg, cg), rows ordered (dy, dx, cin)
    wb3 = params["w_b"].reshape(num_gs, cg, cg, 3, 3)                  # (g, cout, cin, ky, kx)
    wb3 = jnp.transpose(wb3, (0, 3, 4, 2, 1)).reshape(num_gs, 9 * cg, cg)
    wb3 = (wb3 * sb.reshape(num_gs, 1, cg)).astype(cdt)

    # --- f.a : 1x1 conv + BN + ReLU (Pallas) --------------------------------
    x_flat = x_nhwc.reshape(n * h * w, c_in).astype(cdt)
    a = conv1x1_bn_act(x_flat, wa, ba, relu=True, out_dtype=cdt)
    a = a.reshape(n, h, w, w_b)

    # --- 3x3 tap patches (JAX glue, bf16) ------------------------------------
    # TODO(synk): the overlapping strided 3x3 windows are still materialized in
    # HBM by XLA here; BlockSpec cannot express overlapping/strided windows, a
    # manual strided-DMA kernel would be needed to avoid this copy.
    xp = jnp.pad(a, ((0, 0), (1, 1), (1, 1), (0, 0)))
    h_span = (h2 - 1) * stride + 1
    w_span = (w2 - 1) * stride + 1
    taps = [xp[:, dy:dy + h_span:stride, dx:dx + w_span:stride, :]
            for dy in range(3) for dx in range(3)]
    patches = jnp.stack(taps, axis=3)                                  # (n,h2,w2,9,w_b)
    patches = patches.reshape(n, h2, w2, 9, num_gs, cg)
    patches = jnp.transpose(patches, (0, 1, 2, 4, 3, 5))               # (..,g,9,cg)
    patches = patches.reshape(n * h2 * w2, num_gs * 9 * cg)

    # --- skip-path input ------------------------------------------------------
    x_s = x_nhwc[:, ::stride, ::stride, :].reshape(n * h2 * w2, c_in).astype(cdt)

    # --- fused tail: grouped 3x3 + 1x1 + (proj) + residual + ReLU (Pallas) ---
    if proj_block:
        sp, bp = fold_bn(*params["bn_proj"])
        wp = (params["w_proj"][:, :, 0, 0].T * sp[None, :]).astype(cdt)
        out = fused_tail(patches, wb3, bb, wc, bc, x_s, wp, bp,
                         num_gs=num_gs, cg=cg, out_dtype=jnp.float32)
    else:
        out = fused_tail(patches, wb3, bb, wc, bc, x_s,
                         num_gs=num_gs, cg=cg, out_dtype=jnp.float32)
    return out.reshape(n, h2, w2, w_out)


# ---------------------------------------------------------------------------
# Pure-JAX reference (for correctness check)
# ---------------------------------------------------------------------------
def res_bottleneck_block_ref(x_nhwc, params, *, stride, num_gs, proj_block):
    def conv(x, w_oihw, s, groups, pad):
        return jax.lax.conv_general_dilated(
            x, jnp.transpose(w_oihw, (2, 3, 1, 0)),
            window_strides=(s, s), padding=pad,
            dimension_numbers=("NHWC", "HWIO", "NHWC"),
            feature_group_count=groups,
            precision=jax.lax.Precision.HIGHEST)

    def bn(x, p):
        scale, bias = fold_bn(*p)
        return x * scale + bias

    a = jax.nn.relu(bn(conv(x_nhwc, params["w_a"], 1, 1, "VALID"), params["bn_a"]))
    b = jax.nn.relu(bn(conv(a, params["w_b"], stride, num_gs, ((1, 1), (1, 1))),
                       params["bn_b"]))
    c = bn(conv(b, params["w_c"], 1, 1, "VALID"), params["bn_c"])
    if proj_block:
        skip = bn(conv(x_nhwc, params["w_proj"], stride, 1, "VALID"),
                  params["bn_proj"])
    else:
        skip = x_nhwc
    return jax.nn.relu(c + skip)


if __name__ == "__main__":
    # ResBottleneckBlock(w_in=8, w_out=16, stride=2, bot_mul=1.0, num_gs=2)
    w_in, w_out, stride, bot_mul, num_gs = 8, 16, 2, 1.0, 2
    n, h, w = 2, 16, 16

    key = jax.random.PRNGKey(0)
    kx, kp = jax.random.split(key)
    x_nchw = jax.random.normal(kx, (n, w_in, h, w), jnp.float32)   # PyTorch NCHW
    x_nhwc = jnp.transpose(x_nchw, (0, 2, 3, 1))                   # kernel layout

    params, w_b, proj_block = init_params(kp, w_in, w_out, stride, bot_mul, num_gs)

    fwd = jax.jit(functools.partial(
        res_bottleneck_block, stride=stride, num_gs=num_gs,
        proj_block=proj_block, w_b=w_b))
    out = jax.block_until_ready(fwd(x_nhwc, params))

    ref = res_bottleneck_block_ref(
        x_nhwc, params, stride=stride, num_gs=num_gs, proj_block=proj_block)
    assert out.shape == ref.shape == (n, h // stride, w // stride, w_out)

    err = float(jnp.max(jnp.abs(out - ref)))
    # bf16-aware tolerance: ~2% of the output dynamic range (f32 reference)
    tol = 2e-2 * max(1.0, float(jnp.max(jnp.abs(ref))))
    assert err < tol, f"max abs err {err} (tol {tol})"
    print("KERNEL_OK")
</pallas_src>

<mosaic_0001>
module attributes {stable_mosaic.version = 11 : i64} {
  func.func @_mm_bias_act_kernel(%arg0: i32, %arg1: memref<256x8xbf16, #tpu.memory_space<vmem>>, %arg2: memref<8x16xbf16, #tpu.memory_space<vmem>>, %arg3: memref<1x16xf32, #tpu.memory_space<vmem>>, %arg4: memref<256x16xbf16, #tpu.memory_space<vmem>>) attributes {dimension_semantics = [#tpu.dimension_semantics<parallel>], iteration_bounds = array<i64: 2>, scalar_prefetch = 0 : i64, scratch_operands = 0 : i64, tpu.core_type = #tpu.core_type<tc>, window_params = [{transform_indices = @transform_0, window_bounds = array<i64: 256, 8>}, {pipeline_mode = #tpu.pipeline_mode<synchronous>, transform_indices = @transform_1, window_bounds = array<i64: 8, 16>}, {pipeline_mode = #tpu.pipeline_mode<synchronous>, transform_indices = @transform_2, window_bounds = array<i64: 1, 16>}, {transform_indices = @transform_3, window_bounds = array<i64: 256, 16>}]} {
    %c0 = arith.constant 0 : index
    %c0_0 = arith.constant 0 : index
    %0 = vector.load %arg1[%c0, %c0_0] : memref<256x8xbf16, #tpu.memory_space<vmem>>, vector<256x8xbf16>
    %c0_1 = arith.constant 0 : index
    %c0_2 = arith.constant 0 : index
    %1 = vector.load %arg2[%c0_1, %c0_2] : memref<8x16xbf16, #tpu.memory_space<vmem>>, vector<8x16xbf16>
    %cst = arith.constant dense<0.000000e+00> : vector<256x16xf32>
    %2 = tpu.matmul %0, %1, %cst {dimension_numbers = #tpu.dot_dimension_numbers<[1], [0], [0], [1], [0, 0, 1, 1], [], []>} : vector<256x8xbf16>, vector<8x16xbf16>, vector<256x16xf32> -> vector<256x16xf32>
    %c0_3 = arith.constant 0 : index
    %c0_4 = arith.constant 0 : index
    %3 = vector.load %arg3[%c0_3, %c0_4] : memref<1x16xf32, #tpu.memory_space<vmem>>, vector<1x16xf32>
    %4 = vector.broadcast %3 : vector<1x16xf32> to vector<256x16xf32>
    %5 = arith.addf %2, %4 : vector<256x16xf32>
    %cst_5 = arith.constant 0.000000e+00 : f32
    %6 = vector.broadcast %cst_5 : f32 to vector<256x16xf32>
    %7 = arith.maximumf %5, %6 : vector<256x16xf32>
    %8 = arith.truncf %7 : vector<256x16xf32> to vector<256x16xbf16>
    %c0_6 = arith.constant 0 : index
    %c0_7 = arith.constant 0 : index
    %9 = vector.load %arg4[%c0_6, %c0_7] : memref<256x16xbf16, #tpu.memory_space<vmem>>, vector<256x16xbf16>
    tpu.vector_store %arg4[%c0_6, %c0_7], %8 {strides = array<i32>} : memref<256x16xbf16, #tpu.memory_space<vmem>>, vector<256x16xbf16>,
    return
  }
  func.func @transform_0(%arg0: i32) -> (i32, i32) {
    %c0_i32 = arith.constant 0 : i32
    %c0_i32_0 = arith.constant 0 : i32
    return %arg0, %c0_i32 : i32, i32
  }
  func.func @transform_1(%arg0: i32) -> (i32, i32) {
    %c0_i32 = arith.constant 0 : i32
    %c0_i32_0 = arith.constant 0 : i32
    %c0_i32_1 = arith.constant 0 : i32
    return %c0_i32, %c0_i32_0 : i32, i32
  }
  func.func @transform_2(%arg0: i32) -> (i32, i32) {
    %c0_i32 = arith.constant 0 : i32
    %c0_i32_0 = arith.constant 0 : i32
    %c0_i32_1 = arith.constant 0 : i32
    return %c0_i32, %c0_i32_0 : i32, i32
  }
  func.func @transform_3(%arg0: i32) -> (i32, i32) {
    %c0_i32 = arith.constant 0 : i32
    %c0_i32_0 = arith.constant 0 : i32
    return %arg0, %c0_i32 : i32, i32
  }
}

module attributes {stable_mosaic.version = 11 : i64} {
  func.func @_fused_tail_kernel(%arg0: i32, %arg1: memref<64x144xbf16, #tpu.memory_space<vmem>>, %arg2: memref<2x72x8xbf16, #tpu.memory_space<vmem>>, %arg3: memref<1x16xf32, #tpu.memory_space<vmem>>, %arg4: memref<16x16xbf16, #tpu.memory_space<vmem>>, %arg5: memref<1x16xf32, #tpu.memory_space<vmem>>, %arg6: memref<64x8xbf16, #tpu.memory_space<vmem>>, %arg7: memref<8x16xbf16, #tpu.memory_space<vmem>>, %arg8: memref<1x16xf32, #tpu.memory_space<vmem>>, %arg9: memref<64x16xf32, #tpu.memory_space<vmem>>) attributes {dimension_semantics = [#tpu.dimension_semantics<parallel>], iteration_bounds = array<i64: 2>, scalar_prefetch = 0 : i64, scratch_operands = 0 : i64, tpu.core_type = #tpu.core_type<tc>, window_params = [{transform_indices = @transform_0, window_bounds = array<i64: 64, 144>}, {pipeline_mode = #tpu.pipeline_mode<synchronous>, transform_indices = @transform_1, window_bounds = array<i64: 2, 72, 8>}, {pipeline_mode = #tpu.pipeline_mode<synchronous>, transform_indices = @transform_2, window_bounds = array<i64: 1, 16>}, {pipeline_mode = #tpu.pipeline_mode<synchronous>, transform_indices = @transform_3, window_bounds = array<i64: 16, 16>}, {pipeline_mode = #tpu.pipeline_mode<synchronous>, transform_indices = @transform_4, window_bounds = array<i64: 1, 16>}, {transform_indices = @transform_5, window_bounds = array<i64: 64, 8>}, {pipeline_mode = #tpu.pipeline_mode<synchronous>, transform_indices = @transform_6, window_bounds = array<i64: 8, 16>}, {pipeline_mode = #tpu.pipeline_mode<synchronous>, transform_indices = @transform_7, window_bounds = array<i64: 1, 16>}, {transform_indices = @transform_8, window_bounds = array<i64: 64, 16>}]} {
    %c0 = arith.constant 0 : index
    %c0_0 = arith.constant 0 : index
    %0 = vector.load %arg1[%c0, %c0_0] : memref<64x144xbf16, #tpu.memory_space<vmem>>, vector<64x72xbf16>
    %c0_1 = arith.constant 0 : index
    %c0_2 = arith.constant 0 : index
    %c0_3 = arith.constant 0 : index
    %1 = vector.load %arg2[%c0_1, %c0_2, %c0_3] : memref<2x72x8xbf16, #tpu.memory_space<vmem>>, vector<1x72x8xbf16>
    %2 = vector.shape_cast %1 : vector<1x72x8xbf16> to vector<72x8xbf16>
    %cst = arith.constant dense<0.000000e+00> : vector<64x8xf32>
    %3 = tpu.matmul %0, %2, %cst {dimension_numbers = #tpu.dot_dimension_numbers<[1], [0], [0], [1], [0, 0, 1, 1], [], []>} : vector<64x72xbf16>, vector<72x8xbf16>, vector<64x8xf32> -> vector<64x8xf32>
    %c0_4 = arith.constant 0 : index
    %c72 = arith.constant 72 : index
    %4 = vector.load %arg1[%c0_4, %c72] : memref<64x144xbf16, #tpu.memory_space<vmem>>, vector<64x72xbf16>
    %c1 = arith.constant 1 : index
    %c0_5 = arith.constant 0 : index
    %c0_6 = arith.constant 0 : index
    %5 = vector.load %arg2[%c1, %c0_5, %c0_6] : memref<2x72x8xbf16, #tpu.memory_space<vmem>>, vector<1x72x8xbf16>
    %6 = vector.shape_cast %5 : vector<1x72x8xbf16> to vector<72x8xbf16>
    %cst_7 = arith.constant dense<0.000000e+00> : vector<64x8xf32>
    %7 = tpu.matmul %4, %6, %cst_7 {dimension_numbers = #tpu.dot_dimension_numbers<[1], [0], [0], [1], [0, 0, 1, 1], [], []>} : vector<64x72xbf16>, vector<72x8xbf16>, vector<64x8xf32> -> vector<64x8xf32>
    %8 = tpu.concatenate %3, %7 in 1 : vector<64x8xf32>, vector<64x8xf32> -> vector<64x16xf32>
    %c0_8 = arith.constant 0 : index
    %c0_9 = arith.constant 0 : index
    %9 = vector.load %arg3[%c0_8, %c0_9] : memref<1x16xf32, #tpu.memory_space<vmem>>, vector<1x16xf32>
    %10 = vector.broadcast %9 : vector<1x16xf32> to vector<64x16xf32>
    %11 = arith.addf %8, %10 : vector<64x16xf32>
    %cst_10 = arith.constant 0.000000e+00 : f32
    %12 = vector.broadcast %cst_10 : f32 to vector<64x16xf32>
    %13 = arith.maximumf %11, %12 : vector<64x16xf32>
    %14 = arith.truncf %13 : vector<64x16xf32> to vector<64x16xbf16>
    %c0_11 = arith.constant 0 : index
    %c0_12 = arith.constant 0 : index
    %15 = vector.load %arg4[%c0_11, %c0_12] : memref<16x16xbf16, #tpu.memory_space<vmem>>, vector<16x16xbf16>
    %cst_13 = arith.constant dense<0.000000e+00> : vector<64x16xf32>
    %16 = tpu.matmul %14, %15, %cst_13 {dimension_numbers = #tpu.dot_dimension_numbers<[1], [0], [0], [1], [0, 0, 1, 1], [], []>} : vector<64x16xbf16>, vector<16x16xbf16>, vector<64x16xf32> -> vector<64x16xf32>
    %c0_14 = arith.constant 0 : index
    %c0_15 = arith.constant 0 : index
    %17 = vector.load %arg5[%c0_14, %c0_15] : memref<1x16xf32, #tpu.memory_space<vmem>>, vector<1x16xf32>
    %18 = vector.broadcast %17 : vector<1x16xf32> to vector<64x16xf32>
    %19 = arith.addf %16, %18 : vector<64x16xf32>
    %c0_16 = arith.constant 0 : index
    %c0_17 = arith.constant 0 : index
    %20 = vector.load %arg6[%c0_16, %c0_17] : memref<64x8xbf16, #tpu.memory_space<vmem>>, vector<64x8xbf16>
    %c0_18 = arith.constant 0 : index
    %c0_19 = arith.constant 0 : index
    %21 = vector.load %arg7[%c0_18, %c0_19] : memref<8x16xbf16, #tpu.memory_space<vmem>>, vector<8x16xbf16>
    %cst_20 = arith.constant dense<0.000000e+00> : vector<64x16xf32>
    %22 = tpu.matmul %20, %21, %cst_20 {dimension_numbers = #tpu.dot_dimension_numbers<[1], [0], [0], [1], [0, 0, 1, 1], [], []>} : vector<64x8xbf16>, vector<8x16xbf16>, vector<64x16xf32> -> vector<64x16xf32>
    %c0_21 = arith.constant 0 : index
    %c0_22 = arith.constant 0 : index
    %23 = vector.load %arg8[%c0_21, %c0_22] : memref<1x16xf32, #tpu.memory_space<vmem>>, vector<1x16xf32>
    %24 = vector.broadcast %23 : vector<1x16xf32> to vector<64x16xf32>
    %25 = arith.addf %22, %24 : vector<64x16xf32>
    %26 = arith.addf %19, %25 : vector<64x16xf32>
    %cst_23 = arith.constant 0.000000e+00 : f32
    %27 = vector.broadcast %cst_23 : f32 to vector<64x16xf32>
    %28 = arith.maximumf %26, %27 : vector<64x16xf32>
    %c0_24 = arith.constant 0 : index
    %c0_25 = arith.constant 0 : index
    %29 = vector.load %arg9[%c0_24, %c0_25] : memref<64x16xf32, #tpu.memory_space<vmem>>, vector<64x16xf32>
    tpu.vector_store %arg9[%c0_24, %c0_25], %28 {strides = array<i32>} : memref<64x16xf32, #tpu.memory_space<vmem>>, vector<64x16xf32>,
    return
  }
  func.func @transform_0(%arg0: i32) -> (i32, i32) {
    %c0_i32 = arith.constant 0 : i32
    %c0_i32_0 = arith.constant 0 : i32
    return %arg0, %c0_i32 : i32, i32
  }
  func.func @transform_1(%arg0: i32) -> (i32, i32, i32) {
    %c0_i32 = arith.constant 0 : i32
    %c0_i32_0 = arith.constant 0 : i32
    %c0_i32_1 = arith.constant 0 : i32
    %c0_i32_2 = arith.constant 0 : i32
    return %c0_i32, %c0_i32_0, %c0_i32_1 : i32, i32, i32
  }
  func.func @transform_2(%arg0: i32) -> (i32, i32) {
    %c0_i32 = arith.constant 0 : i32
    %c0_i32_0 = arith.constant 0 : i32
    %c0_i32_1 = arith.constant 0 : i32
    return %c0_i32, %c0_i32_0 : i32, i32
  }
  func.func @transform_3(%arg0: i32) -> (i32, i32) {
    %c0_i32 = arith.constant 0 : i32
    %c0_i32_0 = arith.constant 0 : i32
    %c0_i32_1 = arith.constant 0 : i32
    return %c0_i32, %c0_i32_0 : i32, i32
  }
  func.func @transform_4(%arg0: i32) -> (i32, i32) {
    %c0_i32 = arith.constant 0 : i32
    %c0_i32_0 = arith.constant 0 : i32
    %c0_i32_1 = arith.constant 0 : i32
    return %c0_i32, %c0_i32_0 : i32, i32
  }
  func.func @transform_5(%arg0: i32) -> (i32, i32) {
    %c0_i32 = arith.constant 0 : i32
    %c0_i32_0 = arith.constant 0 : i32
    return %arg0, %c0_i32 : i32, i32
  }
  func.func @transform_6(%arg0: i32) -> (i32, i32) {
    %c0_i32 = arith.constant 0 : i32
    %c0_i32_0 = arith.constant 0 : i32
    %c0_i32_1 = arith.constant 0 : i32
    return %c0_i32, %c0_i32_0 : i32, i32
  }
  func.func @transform_7(%arg0: i32) -> (i32, i32) {
    %c0_i32 = arith.constant 0 : i32
    %c0_i32_0 = arith.constant 0 : i32
    %c0_i32_1 = arith.constant 0 : i32
    return %c0_i32, %c0_i32_0 : i32, i32
  }
  func.func @transform_8(%arg0: i32) -> (i32, i32) {
    %c0_i32 = arith.constant 0 : i32
    %c0_i32_0 = arith.constant 0 : i32
    return %arg0, %c0_i32 : i32, i32
  }
}

</mosaic_0001>

<bundles_post_ra>
// kernel: res_bottleneck_block.2
= control target key start
LH: loop header
LB: loop body
LE: loop exit
PB: predicated region body
PF: predicated region fallthrough
CT: control target
= control target key end

     0   :  { %s734_s12 = smov 0   ;;  %s880_s0 = inlined_call_operand.vmem [shape: bf16[512,8], index: 0, kind: input, shape index: {}]   ;;  %s881_s1 = inlined_call_operand.vmem [shape: bf16[8,16], index: 1, kind: input, shape index: {}]   ;;  %s882_s2 = inlined_call_operand.vmem [shape: f32[1,16], index: 2, kind: input, shape index: {}]   ;;  %s883_s3 = inlined_call_operand.vmem [shape: bf16[512,16], index: 3, kind: output, shape index: {}]  }
   0x1 LB: > { %s587_s13 = sadd.s32 4294967295, %s712_s12   ;;  %p591_p0 = scmp.ge.s32.totalorder %s712_s12, 1  ;;  %s712_s12 = sphi %s734_s12, %s13_s12  }
   0x2   : > { %p138_p1 = scmp.lt.s32.totalorder %s712_s12, 3 }
   0x4   : > { %p139_p2 = pnand %p591_p0, %p138_p1 }
   0x5   : > { %s592_s16 = sshll.u32 (!%p139_p2), %s587_s13, 5 }
   0x6   : > { %142 = sbr.rel (%p139_p2) target bundleno = 213 (0xd5), region = 32  ;;  %p163_p3 = scmp.lt.s32.totalorder (!%p139_p2), %s592_s16, 63 }
   0xb   : > { %v207_v0 = vld [vmem:[%s881_s1] sm:$0xf]  ;;  %vm341_vm0 = vcmask 1043456   ;;  %s885_s16 = smov (!%p163_p3, %s592_s16), 63  ;;  %vm292_vm1 = vcmask 64512   ;;  %vm498_vm2 = vcmask 125952  }
   0xc   : > { %v343_v1 = vsel %vm341_vm0, %v207_v0, 0  ;;  %s593_s17 = sshll.u32 %s885_s16, 2  ;;  %v772_v18 = vld [vmem:[%s882_s2] ss:$0 sm:$0xff] }
   0xd   : > { %352 = vmatpush.bf16.msra.mxu0 %v343_v1  ;;  %694 = vmatpush.bf16.msra.mxu1 %v343_v1  ;;  %s166_s20 = scalar_lea.vmem %s880_s0, %s593_s17  ;;  %s781_s25 = scalar_lea.vmem %s883_s3, %s593_s17 }
   0xe   : > { %695 = vmatpush.bf16.msra.mxu2 %v343_v1  ;;  %696 = vmatpush.bf16.msra.mxu3 %v343_v1  ;;  %v678_v2 = vld [vmem:[%s166_s20] sm:$0xff]  ;;  %v679_v6 = vld [vmem:[%s166_s20 + $0x8] sm:$0xff]  ;;  %v680_v10 = vld [vmem:[%s166_s20 + $0x10] sm:$0xff] }
   0xf   : > { %v682_v3 = vld [vmem:[%s166_s20 + $0x20] sm:$0xff]  ;;  %v683_v7 = vld [vmem:[%s166_s20 + $0x28] sm:$0xff]  ;;  %v684_v11 = vld [vmem:[%s166_s20 + $0x30] sm:$0xff] }
  0x10   : > { %v686_v4 = vld [vmem:[%s166_s20 + $0x40] sm:$0xff]  ;;  %660 = vmatmul.msk.bf16.vlgmr.msra.gmra.mxu0 %vm292_vm1, %v678_v2  ;;  %664 = vmatmul.msk.bf16.vlgmr.msra.gmra.mxu1 %vm292_vm1, %v682_v3  ;;  %v687_v8 = vld [vmem:[%s166_s20 + $0x48] sm:$0xff]  ;;  %v688_v12 = vld [vmem:[%s166_s20 + $0x50] sm:$0xff] }
  0x11   : > { %v690_v5 = vld [vmem:[%s166_s20 + $0x60] sm:$0xff]  ;;  %668 = vmatmul.msk.bf16.vlgmr.msra.gmra.mxu2 %vm292_vm1, %v686_v4  ;;  %v691_v9 = vld [vmem:[%s166_s20 + $0x68] sm:$0xff]  ;;  %v692_v13 = vld [vmem:[%s166_s20 + $0x70] sm:$0xff] }
  0x12   : > { %672 = vmatmul.msk.bf16.vlgmr.msra.gmra.mxu3 %vm292_vm1, %v690_v5  ;;  %v681_v14 = vld [vmem:[%s166_s20 + $0x18] sm:$0xff] }
  0x13   : > { %v685_v15 = vld [vmem:[%s166_s20 + $0x38] sm:$0xff] }
  0x14   : > { %v689_v16 = vld [vmem:[%s166_s20 + $0x58] sm:$0xff] }
  0x15   : > { %v693_v17 = vld [vmem:[%s166_s20 + $0x78] sm:$0xff] }
  0x20   : > { %661 = vmatmul.msk.bf16.gmra.mxu0 %vm292_vm1, %v679_v6  ;;  %665 = vmatmul.msk.bf16.gmra.mxu1 %vm292_vm1, %v683_v7 }
  0x21   : > { %669 = vmatmul.msk.bf16.gmra.mxu2 %vm292_vm1, %v687_v8 }
  0x22   : > { %673 = vmatmul.msk.bf16.gmra.mxu3 %vm292_vm1, %v691_v9 }
  0x30   : > { %662 = vmatmul.msk.bf16.gmra.mxu0 %vm292_vm1, %v680_v10  ;;  %666 = vmatmul.msk.bf16.gmra.mxu1 %vm292_vm1, %v684_v11 }
  0x31   : > { %670 = vmatmul.msk.bf16.gmra.mxu2 %vm292_vm1, %v688_v12 }
  0x32   : > { %674 = vmatmul.msk.bf16.gmra.mxu3 %vm292_vm1, %v692_v13 }
  0x40   : > { %663 = vmatmul.msk.bf16.gmra.mxu0 %vm292_vm1, %v681_v14  ;;  %667 = vmatmul.msk.bf16.gmra.mxu1 %vm292_vm1, %v685_v15 }
  0x41   : > { %671 = vmatmul.msk.bf16.gmra.mxu2 %vm292_vm1, %v689_v16 }
  0x42   : > { %675 = vmatmul.msk.bf16.gmra.mxu3 %vm292_vm1, %v693_v17 }
  0x8d   : > { %v354_v19 = vpop.f32.mrf.mxu0  ;;  %v374_v20 = vpop.f32.mrf.mxu1 }
  0x8e   : > { %v355_v21 = vadd.f32 %v772_v18, %v354_v19  ;;  %v375_v22 = vadd.f32 %v772_v18, %v374_v20 }
  0x90   : > { %v434_v23 = vmax.f32 %v355_v21, 0.0  ;;  %v442_v24 = vmax.f32 %v375_v22, 0.0 }
  0x92   : > { %v466_v25 = vpack.c.bf16 %v434_v23, %v434_v23  ;;  %v474_v26 = vpack.c.bf16 %v442_v24, %v442_v24 }
  0x94   : > { %499 = vst.msk [vmem:[%s781_s25] sm:$0xf] %vm498_vm2, %v466_v25  ;;  %v394_v27 = vpop.f32.mrf.mxu2 }
  0x95   : > { %v414_v28 = vpop.f32.mrf.mxu3  ;;  %507 = vst.msk [vmem:[%s781_s25 + $0x20] sm:$0xf] %vm498_vm2, %v474_v26  ;;  %v395_v29 = vadd.f32 %v772_v18, %v394_v27  ;;  %v356_v31 = vpop.f32.mrf.mxu0 }
  0x96   : > { %v415_v30 = vadd.f32 %v772_v18, %v414_v28  ;;  %v376_v32 = vpop.f32.mrf.mxu1  ;;  %v357_v33 = vadd.f32 %v772_v18, %v356_v31 }
  0x97   : > { %v377_v34 = vadd.f32 %v772_v18, %v376_v32  ;;  %v450_v35 = vmax.f32 %v395_v29, 0.0 }
  0x98   : > { %v458_v36 = vmax.f32 %v415_v30, 0.0  ;;  %v435_v37 = vmax.f32 %v357_v33, 0.0 }
  0x99   : > { %v443_v38 = vmax.f32 %v377_v34, 0.0  ;;  %v482_v39 = vpack.c.bf16 %v450_v35, %v450_v35 }
  0x9a   : > { %v490_v40 = vpack.c.bf16 %v458_v36, %v458_v36  ;;  %v467_v41 = vpack.c.bf16 %v435_v37, %v435_v37 }
  0x9b   : > { %v475_v42 = vpack.c.bf16 %v443_v38, %v443_v38  ;;  %515 = vst.msk [vmem:[%s781_s25 + $0x40] sm:$0xf] %vm498_vm2, %v482_v39 }
  0x9c   : > { %523 = vst.msk [vmem:[%s781_s25 + $0x60] sm:$0xf] %vm498_vm2, %v490_v40  ;;  %v396_v43 = vpop.f32.mrf.mxu2 }
  0x9d   : > { %v416_v44 = vpop.f32.mrf.mxu3  ;;  %500 = vst.msk [vmem:[%s781_s25 + $0x4] sm:$0xf] %vm498_vm2, %v467_v41  ;;  %v397_v45 = vadd.f32 %v772_v18, %v396_v43  ;;  %v359_v47 = vpop.f32.mrf.mxu0 }
  0x9e   : > { %v417_v46 = vadd.f32 %v772_v18, %v416_v44  ;;  %v379_v48 = vpop.f32.mrf.mxu1  ;;  %508 = vst.msk [vmem:[%s781_s25 + $0x24] sm:$0xf] %vm498_vm2, %v475_v42  ;;  %v360_v49 = vadd.f32 %v772_v18, %v359_v47 }
  0x9f   : > { %v380_v50 = vadd.f32 %v772_v18, %v379_v48  ;;  %v451_v51 = vmax.f32 %v397_v45, 0.0 }
  0xa0   : > { %v459_v52 = vmax.f32 %v417_v46, 0.0  ;;  %v436_v53 = vmax.f32 %v360_v49, 0.0 }
  0xa1   : > { %v444_v54 = vmax.f32 %v380_v50, 0.0  ;;  %v483_v55 = vpack.c.bf16 %v451_v51, %v451_v51 }
  0xa2   : > { %v491_v56 = vpack.c.bf16 %v459_v52, %v459_v52  ;;  %v468_v57 = vpack.c.bf16 %v436_v53, %v436_v53 }
  0xa3   : > { %v476_v58 = vpack.c.bf16 %v444_v54, %v444_v54  ;;  %516 = vst.msk [vmem:[%s781_s25 + $0x44] sm:$0xf] %vm498_vm2, %v483_v55 }
  0xa4   : > { %524 = vst.msk [vmem:[%s781_s25 + $0x64] sm:$0xf] %vm498_vm2, %v491_v56  ;;  %v399_v59 = vpop.f32.mrf.mxu2 }
  0xa5   : > { %v419_v60 = vpop.f32.mrf.mxu3  ;;  %501 = vst.msk [vmem:[%s781_s25 + $0x8] sm:$0xf] %vm498_vm2, %v468_v57  ;;  %v400_v61 = vadd.f32 %v772_v18, %v399_v59  ;;  %v361_v63 = vpop.f32.mrf.mxu0 }
  0xa6   : > { %v420_v62 = vadd.f32 %v772_v18, %v419_v60  ;;  %v381_v0 = vpop.f32.mrf.mxu1  ;;  %509 = vst.msk [vmem:[%s781_s25 + $0x28] sm:$0xf] %vm498_vm2, %v476_v58  ;;  %v362_v1 = vadd.f32 %v772_v18, %v361_v63 }
  0xa7   : > { %v382_v2 = vadd.f32 %v772_v18, %v381_v0  ;;  %v452_v3 = vmax.f32 %v400_v61, 0.0 }
  0xa8   : > { %v460_v4 = vmax.f32 %v420_v62, 0.0  ;;  %v437_v5 = vmax.f32 %v362_v1, 0.0 }
  0xa9   : > { %v445_v6 = vmax.f32 %v382_v2, 0.0  ;;  %v484_v7 = vpack.c.bf16 %v452_v3, %v452_v3 }
  0xaa   : > { %v492_v8 = vpack.c.bf16 %v460_v4, %v460_v4  ;;  %v469_v9 = vpack.c.bf16 %v437_v5, %v437_v5 }
  0xab   : > { %v477_v10 = vpack.c.bf16 %v445_v6, %v445_v6  ;;  %517 = vst.msk [vmem:[%s781_s25 + $0x48] sm:$0xf] %vm498_vm2, %v484_v7 }
  0xac   : > { %525 = vst.msk [vmem:[%s781_s25 + $0x68] sm:$0xf] %vm498_vm2, %v492_v8  ;;  %v401_v11 = vpop.f32.mrf.mxu2 }
  0xad   : > { %v421_v12 = vpop.f32.mrf.mxu3  ;;  %502 = vst.msk [vmem:[%s781_s25 + $0xc] sm:$0xf] %vm498_vm2, %v469_v9  ;;  %v402_v13 = vadd.f32 %v772_v18, %v401_v11  ;;  %v364_v15 = vpop.f32.mrf.mxu0 }
  0xae   : > { %v422_v14 = vadd.f32 %v772_v18, %v421_v12  ;;  %v384_v16 = vpop.f32.mrf.mxu1  ;;  %510 = vst.msk [vmem:[%s781_s25 + $0x2c] sm:$0xf] %vm498_vm2, %v477_v10  ;;  %v365_v17 = vadd.f32 %v772_v18, %v364_v15 }
  0xaf   : > { %v385_v19 = vadd.f32 %v772_v18, %v384_v16  ;;  %v453_v20 = vmax.f32 %v402_v13, 0.0 }
  0xb0   : > { %v461_v21 = vmax.f32 %v422_v14, 0.0  ;;  %v438_v22 = vmax.f32 %v365_v17, 0.0 }
  0xb1   : > { %v446_v23 = vmax.f32 %v385_v19, 0.0  ;;  %v485_v24 = vpack.c.bf16 %v453_v20, %v453_v20 }
  0xb2   : > { %v493_v25 = vpack.c.bf16 %v461_v21, %v461_v21  ;;  %v470_v26 = vpack.c.bf16 %v438_v22, %v438_v22 }
  0xb3   : > { %v478_v27 = vpack.c.bf16 %v446_v23, %v446_v23  ;;  %518 = vst.msk [vmem:[%s781_s25 + $0x4c] sm:$0xf] %vm498_vm2, %v485_v24 }
  0xb4   : > { %526 = vst.msk [vmem:[%s781_s25 + $0x6c] sm:$0xf] %vm498_vm2, %v493_v25  ;;  %v404_v28 = vpop.f32.mrf.mxu2 }
  0xb5   : > { %v424_v29 = vpop.f32.mrf.mxu3  ;;  %503 = vst.msk [vmem:[%s781_s25 + $0x10] sm:$0xf] %vm498_vm2, %v470_v26  ;;  %v405_v30 = vadd.f32 %v772_v18, %v404_v28  ;;  %v366_v32 = vpop.f32.mrf.mxu0 }
  0xb6   : > { %v425_v31 = vadd.f32 %v772_v18, %v424_v29  ;;  %v386_v33 = vpop.f32.mrf.mxu1  ;;  %511 = vst.msk [vmem:[%s781_s25 + $0x30] sm:$0xf] %vm498_vm2, %v478_v27  ;;  %v367_v34 = vadd.f32 %v772_v18, %v366_v32 }
  0xb7   : > { %v387_v35 = vadd.f32 %v772_v18, %v386_v33  ;;  %v454_v36 = vmax.f32 %v405_v30, 0.0 }
  0xb8   : > { %v462_v37 = vmax.f32 %v425_v31, 0.0  ;;  %v439_v38 = vmax.f32 %v367_v34, 0.0 }
  0xb9   : > { %v447_v39 = vmax.f32 %v387_v35, 0.0  ;;  %v486_v40 = vpack.c.bf16 %v454_v36, %v454_v36 }
  0xba   : > { %v494_v41 = vpack.c.bf16 %v462_v37, %v462_v37  ;;  %v471_v42 = vpack.c.bf16 %v439_v38, %v439_v38 }
  0xbb   : > { %v479_v43 = vpack.c.bf16 %v447_v39, %v447_v39  ;;  %519 = vst.msk [vmem:[%s781_s25 + $0x50] sm:$0xf] %vm498_vm2, %v486_v40 }
  0xbc   : > { %527 = vst.msk [vmem:[%s781_s25 + $0x70] sm:$0xf] %vm498_vm2, %v494_v41  ;;  %v406_v44 = vpop.f32.mrf.mxu2 }
  0xbd   : > { %v426_v45 = vpop.f32.mrf.mxu3  ;;  %504 = vst.msk [vmem:[%s781_s25 + $0x14] sm:$0xf] %vm498_vm2, %v471_v42  ;;  %v407_v46 = vadd.f32 %v772_v18, %v406_v44  ;;  %v369_v48 = vpop.f32.mrf.mxu0 }
  0xbe   : > { %v427_v47 = vadd.f32 %v772_v18, %v426_v45  ;;  %v389_v49 = vpop.f32.mrf.mxu1  ;;  %512 = vst.msk [vmem:[%s781_s25 + $0x34] sm:$0xf] %vm498_vm2, %v479_v43  ;;  %v370_v50 = vadd.f32 %v772_v18, %v369_v48 }
  0xbf   : > { %v390_v51 = vadd.f32 %v772_v18, %v389_v49  ;;  %v455_v52 = vmax.f32 %v407_v46, 0.0 }
  0xc0   : > { %v463_v53 = vmax.f32 %v427_v47, 0.0  ;;  %v440_v54 = vmax.f32 %v370_v50, 0.0 }
  0xc1   : > { %v448_v55 = vmax.f32 %v390_v51, 0.0  ;;  %v487_v56 = vpack.c.bf16 %v455_v52, %v455_v52 }
  0xc2   : > { %v495_v57 = vpack.c.bf16 %v463_v53, %v463_v53  ;;  %v472_v58 = vpack.c.bf16 %v440_v54, %v440_v54 }
  0xc3   : > { %v480_v59 = vpack.c.bf16 %v448_v55, %v448_v55  ;;  %520 = vst.msk [vmem:[%s781_s25 + $0x54] sm:$0xf] %vm498_vm2, %v487_v56 }
  0xc4   : > { %528 = vst.msk [vmem:[%s781_s25 + $0x74] sm:$0xf] %vm498_vm2, %v495_v57  ;;  %v409_v60 = vpop.f32.mrf.mxu2 }
  0xc5   : > { %v429_v61 = vpop.f32.mrf.mxu3  ;;  %505 = vst.msk [vmem:[%s781_s25 + $0x18] sm:$0xf] %vm498_vm2, %v472_v58  ;;  %v410_v62 = vadd.f32 %v772_v18, %v409_v60  ;;  %v371_v0 = vpop.f32.mrf.mxu0 }
  0xc6   : > { %v430_v63 = vadd.f32 %v772_v18, %v429_v61  ;;  %v391_v1 = vpop.f32.mrf.mxu1  ;;  %513 = vst.msk [vmem:[%s781_s25 + $0x38] sm:$0xf] %vm498_vm2, %v480_v59  ;;  %v372_v2 = vadd.f32 %v772_v18, %v371_v0 }
  0xc7   : > { %v392_v3 = vadd.f32 %v772_v18, %v391_v1  ;;  %v456_v4 = vmax.f32 %v410_v62, 0.0 }
  0xc8   : > { %v464_v5 = vmax.f32 %v430_v63, 0.0  ;;  %v441_v6 = vmax.f32 %v372_v2, 0.0 }
  0xc9   : > { %v449_v7 = vmax.f32 %v392_v3, 0.0  ;;  %v488_v8 = vpack.c.bf16 %v456_v4, %v456_v4 }
  0xca   : > { %v496_v9 = vpack.c.bf16 %v464_v5, %v464_v5  ;;  %v473_v10 = vpack.c.bf16 %v441_v6, %v441_v6 }
  0xcb   : > { %v481_v11 = vpack.c.bf16 %v449_v7, %v449_v7  ;;  %521 = vst.msk [vmem:[%s781_s25 + $0x58] sm:$0xf] %vm498_vm2, %v488_v8 }
  0xcc   : > { %529 = vst.msk [vmem:[%s781_s25 + $0x78] sm:$0xf] %vm498_vm2, %v496_v9  ;;  %v411_v12 = vpop.f32.mrf.mxu2 }
  0xcd   : > { %v431_v13 = vpop.f32.mrf.mxu3  ;;  %506 = vst.msk [vmem:[%s781_s25 + $0x1c] sm:$0xf] %vm498_vm2, %v473_v10  ;;  %v412_v14 = vadd.f32 %v772_v18, %v411_v12 }
  0xce   : > { %v432_v15 = vadd.f32 %v772_v18, %v431_v13  ;;  %514 = vst.msk [vmem:[%s781_s25 + $0x3c] sm:$0xf] %vm498_vm2, %v481_v11 }
  0xcf   : > { %v457_v16 = vmax.f32 %v412_v14, 0.0 }
  0xd0   : > { %v465_v17 = vmax.f32 %v432_v15, 0.0 }
  0xd1   : > { %v489_v19 = vpack.c.bf16 %v457_v16, %v457_v16 }
  0xd2   : > { %v497_v20 = vpack.c.bf16 %v465_v17, %v465_v17 }
  0xd3   : > { %522 = vst.msk [vmem:[%s781_s25 + $0x5c] sm:$0xf] %vm498_vm2, %v489_v19 }
  0xd4   : > { %530 = vst.msk [vmem:[%s781_s25 + $0x7c] sm:$0xf] %vm498_vm2, %v497_v20 }
  0xd5 PF: > { %s13_s12 = sadd.s32 1, %s712_s12  }
  0xd6   : > { %p10_p4 = scmp.ge.s32.totalorder %s13_s12, 4  }
  0xd8   :  { %12 = sbr.rel (!%p10_p4) target bundleno = 1 (0x1), region = 62 }

// kernel: mul.32
= control target key start
LH: loop header
LB: loop body
LE: loop exit
PB: predicated region body
PF: predicated region fallthrough
CT: control target
= control target key end

     0   :  { %vm7_vm0 = vcmask 64512   ;;  %s39_s0 = inlined_call_operand.vmem [shape: f32[16], index: 0, kind: input, shape index: {}]   ;;  %s40_s1 = inlined_call_operand.vmem [shape: f32[2,8], index: 1, kind: output, shape index: {}]  }
   0x1   :  { %v4_v0 = vld [vmem:[%s39_s0] sm:$0x1]  ;;  %s22_s0 = smov 120  }
   0x2   :  { %5 = vst [vmem:[#allocation1] sm:$0x1] %v4_v0 }
   0x9   :  { %v9_v1 = vld [vmem:[#allocation1] sm:$0x1]  }
   0xa   :  { %v6_v2 = vld [vmem:[#allocation1] sm:$0x1]   ;;  %10 = vrot.lane.b32.xlu0 %v9_v1, %s22_s0 }
   0xb   :  { %8 = vst.msk [vmem:[#allocation0] sm:$0x1] %vm7_vm0, %v6_v2  }
  0x7c   :  { %v11_v3 = vpop.permute.xlu0 %10  }
  0x7d   :  { %14 = vst.msk [vmem:[#allocation0 + $0x1] sm:$0x1] %vm7_vm0, %v11_v3  }
  0x84   :  { %v17_v4 = vld [vmem:[#allocation0] sm:$0x3] }
  0x85   :  { %20 = vst [vmem:[%s40_s1] sm:$0x3] %v17_v4 }

// kernel: res_bottleneck_block.3
= control target key start
LH: loop header
LB: loop body
LE: loop exit
PB: predicated region body
PF: predicated region fallthrough
CT: control target
= control target key end

     0   :  { %13 = vsyncpa [#allocation3], 0  ;;  %s1450_s0 = inlined_call_operand.vmem [shape: bf16[128,144], index: 0, kind: input, shape index: {}]   ;;  %s1451_s1 = inlined_call_operand.vmem [shape: bf16[2,72,8], index: 1, kind: input, shape index: {}]   ;;  %s1452_s2 = inlined_call_operand.vmem [shape: f32[1,16], index: 2, kind: input, shape index: {}]   ;;  %s1453_s3 = inlined_call_operand.vmem [shape: bf16[16,16], index: 3, kind: input, shape index: {}]   ;;  %s1454_s4 = inlined_call_operand.vmem [shape: f32[1,16], index: 4, kind: input, shape index: {}]   ;;  %s1455_s5 = inlined_call_operand.vmem [shape: bf16[128,8], index: 5, kind: input, shape index: {}]   ;;  %s1456_s6 = inlined_call_operand.vmem [shape: bf16[8,16], index: 6, kind: input, shape index: {}]   ;;  %s1457_s7 = inlined_call_operand.vmem [shape: f32[1,16], index: 7, kind: input, shape index: {}]   ;;  %s1458_s8 = inlined_call_operand.hbm [shape: f32[128,16], index: 8, kind: output, shape index: {}]  }
   0x1   :  { %15 = vsyncpa [#allocation3 + $0x1], 0  ;;  %s1219_s27 = smov 0   ;;  %s1221_s28 = smov 0  }
   0x2   :  { %s1223_s29 = smov 0   ;;  %s1225_s30 = smov 0  }
   0x3 LB: > { %s1240_s9 = sadd.s32 4294967295, %s1169_s30   ;;  %s895_s10 = sadd.s32 4294967294, %s1169_s30   ;;  %s1169_s30 = sphi %s1225_s30, %s1464_s30   ;;  %s1165_s29 = sphi %s1223_s29, %s1463_s29   ;;  %s1161_s28 = sphi %s1221_s28, %s1462_s28   ;;  %s1157_s27 = sphi %s1219_s27, %s1461_s27  }
   0x4   : > { %s1244_s11 = sadd.s32 1, %s1169_s30   ;;  %s206_s12 = sadd.s32 1, %s1165_s29 }
   0x5   : > { %s203_s13 = ssub.s32 %s1169_s30, %s1244_s11  ;;  %p216_p0 = scmp.ne.s32.totalorder %s1165_s29, %s1161_s28 }
   0x6   : > { %p204_p1 = scmp.eq.s32.totalorder %s203_s13, 0  ;;  %p217_p2 = scmp.eq.s32.totalorder %s1240_s9, 1 }
   0x7   : > { %p222_p3 = scmp.ne.s32.totalorder %s1161_s28, %s1157_s27  ;;  %p223_p4 = scmp.eq.s32.totalorder %s895_s10, 1 }
   0x8   : > { %s1255_s14 = scalar_select %p204_p1, %s1165_s29, %s206_s12  }
   0x9   : > { %p1257_p5 = por %p217_p2, %p216_p0  ;;  %p1261_p6 = por %p223_p4, %p222_p3 }
   0xa   : > { %p898_p7 = scmp.ge.s32.totalorder %s1169_s30, 1  ;;  %p278_p8 = scmp.lt.s32.totalorder %s1169_s30, 3 }
   0xc   : > { %p279_p9 = pnand %p898_p7, %p278_p8 }
   0xd   : > { %s900_s17 = sshll.u32 (!%p279_p9), %s1240_s9, 3  ;;  %s1171_s26 = smov (!%p279_p9), 56  }
   0xe   : > { %282 = sbr.rel (%p279_p9) target bundleno = 603 (0x25b), region = 52  ;;  %p319_p10 = scmp.lt.s32.totalorder (!%p279_p9), %s900_s17, 15 }
   0xf   : > { %s315_s22 = sand.u32 (!%p279_p9), 1, %s1161_s28  }
  0x13   : > { %v949_v0 = vld [vmem:[%s1451_s1 + $0x44] sm:$0xf]  ;;  %vm410_vm0 = vcmask 1043456   ;;  %s1466_s17 = smov (!%p319_p10, %s900_s17), 15  ;;  %v1055_v4 = vld [vmem:[%s1451_s1 + $0x3c] sm:$0xff]  ;;  %v1054_v13 = vld [vmem:[%s1451_s1 + $0x34] sm:$0xff] }
  0x14   : > { %v531_v1 = vunpack.c.l.b16 %v949_v0  ;;  %s1035_s20 = sshll.u32 %s1466_s17, 3  ;;  %v1053_v30 = vld [vmem:[%s1451_s1 + $0x2c] sm:$0xff]  ;;  %v1052_v31 = vld [vmem:[%s1451_s1 + $0x24] sm:$0xff]  ;;  %vm509_vm1 = vcmask 457728   ;;  %vm397_vm2 = vcmask 588800   ;;  %v1043_v43 = vld [vmem:[%s1451_s1 + $0x18] sm:$0xff] }
  0x15   : > { %s1278_s23 = scalar_lea.vmem %s1450_s0, %s1035_s20  ;;  %v349_v38 = vld [vmem:[%s1451_s1 + $0x20] sm:$0xf]  ;;  %v1042_v44 = vld [vmem:[%s1451_s1 + $0x10] sm:$0xff]  ;;  %v1041_v46 = vld [vmem:[%s1451_s1 + $0x8] sm:$0xff]  ;;  %s1172_s20 = smov 8   ;;  %vm617_vm3 = vcmask 64512  }
  0x16   : > { %v536_v2 = vpack.c.b16 %v531_v1, %v531_v1  ;;  %v952_v5 = vld [vmem:[%s1278_s23] sm:$0xf]  ;;  %v1045_v6 = vld [vmem:[%s1278_s23 + $0x4] sm:$0xf0]  ;;  %v960_v7 = vld [vmem:[%s1278_s23 + $0x10] sm:$0xf]  ;;  %v387_v39 = vunpack.c.l.b16 %v349_v38 }
  0x17   : > { %v953_v8 = vor.u32 %v1045_v6, %v952_v5  ;;  %v1047_v9 = vld [vmem:[%s1278_s23 + $0x14] sm:$0xf0]  ;;  %v968_v11 = vld [vmem:[%s1278_s23 + $0x20] sm:$0xf]  ;;  %v1049_v12 = vld [vmem:[%s1278_s23 + $0x24] sm:$0xf0] }
  0x18   : > { %v554_v3 = vsel %vm410_vm0, %v536_v2, 0  ;;  %v961_v10 = vor.u32 %v1047_v9, %v960_v7  ;;  %v1044_v14 = vld [vmem:[%s1278_s23 + $0x4] sm:$0xf]  ;;  %v954_v15 = vld [vmem:[%s1278_s23 + $0x8] sm:$0xf0]  ;;  %v969_v16 = vor.u32 %v1049_v12, %v968_v11  ;;  %v392_v41 = vpack.c.b16 %v387_v39, %v387_v39 }
  0x19   : > { %559 = vmatpush.bf16.msra.mxu1 %v554_v3  ;;  %493 = vrot.lane.b32.xlu0 %v953_v8, %s1171_s26  ;;  %v1046_v17 = vld [vmem:[%s1278_s23 + $0x14] sm:$0xf]  ;;  %v962_v18 = vld [vmem:[%s1278_s23 + $0x18] sm:$0xf0]  ;;  %v957_v19 = vor.u32 %v1044_v14, %v954_v15  ;;  %v1048_v20 = vld [vmem:[%s1278_s23 + $0x24] sm:$0xf] }
  0x1a   : > { %497 = vrot.lane.b32.xlu1 %v961_v10, %s1171_s26  ;;  %501 = vrot.lane.b32.xlu2 %v969_v16, %s1171_s26  ;;  %v970_v21 = vld [vmem:[%s1278_s23 + $0x28] sm:$0xf0]  ;;  %v965_v22 = vor.u32 %v1046_v17, %v962_v18  ;;  %v976_v24 = vld [vmem:[%s1278_s23 + $0x30] sm:$0xf]  ;;  %v412_v42 = vsel %vm410_vm0, %v392_v41, 0  ;;  %vm662_vm4 = vcmask 130048  }
  0x1b   : > { %v973_v23 = vor.u32 %v1048_v20, %v970_v21  ;;  %v1051_v25 = vld [vmem:[%s1278_s23 + $0x34] sm:$0xf0]  ;;  %v1050_v26 = vld [vmem:[%s1278_s23 + $0x34] sm:$0xf]  ;;  %v978_v27 = vld [vmem:[%s1278_s23 + $0x38] sm:$0xf0]  ;;  %417 = vmatpush.bf16.msra.mxu0 %v412_v42 }
  0x1c   : > { %v977_v28 = vor.u32 %v1051_v25, %v976_v24  ;;  %v981_v29 = vor.u32 %v1050_v26, %v978_v27  ;;  %v1040_v48 = vld [vmem:[%s1451_s1] sm:$0xff]  ;;  %v1036_v50 = vld [vmem:[%s1278_s23 + $0x4] sm:$0xf0]  ;;  %v911_v55 = vld [vmem:[%s1278_s23 + $0x10] sm:$0xf] }
  0x1d   : > { %560 = vmatpush.bf16.msra.mxu1 %v1055_v4  ;;  %v907_v49 = vld [vmem:[%s1278_s23] sm:$0xf]  ;;  %v1037_v56 = vld [vmem:[%s1278_s23 + $0x14] sm:$0xf0]  ;;  %v1038_v59 = vld [vmem:[%s1278_s23 + $0x24] sm:$0xf0] }
  0x1e   : > { %v908_v51 = vor.u32 %v1036_v50, %v907_v49  ;;  %v912_v57 = vor.u32 %v1037_v56, %v911_v55  ;;  %v915_v58 = vld [vmem:[%s1278_s23 + $0x20] sm:$0xf]  ;;  %v919_v61 = vld [vmem:[%s1278_s23 + $0x30] sm:$0xf]  ;;  %v1039_v62 = vld [vmem:[%s1278_s23 + $0x34] sm:$0xf0] }
  0x1f   : > { %418 = vmatpush.bf16.msra.mxu0 %v1043_v43  ;;  %v916_v60 = vor.u32 %v1038_v59, %v915_v58  ;;  %v920_v63 = vor.u32 %v1039_v62, %v919_v61  ;;  %s904_s23 = sshll.u32 %s1466_s17, 2  ;;  %v712_v8 = vld [vmem:[%s1456_s6] sm:$0xf] }
  0x20   : > { %s1356_s24 = scalar_lea.vmem %s1455_s5, %s904_s23  ;;  %v750_v9 = vsel %vm410_vm0, %v712_v8, 0  ;;  %v1056_v11 = vld [vmem:[%s1453_s3] sm:$0xff] }
  0x21   : > { %561 = vmatpush.bf16.msra.mxu1 %v1054_v13  ;;  %495 = vrot.lane.b32.xlu0 %v957_v19, %s1171_s26  ;;  %v1057_v10 = vld [vmem:[%s1356_s24] sm:$0xff]  ;;  %v1058_v13 = vld [vmem:[%s1356_s24 + $0x8] sm:$0xff]  ;;  %v1059_v17 = vld [vmem:[%s1356_s24 + $0x10] sm:$0xff] }
  0x22   : > { %499 = vrot.lane.b32.xlu1 %v965_v22, %s1171_s26  ;;  %503 = vrot.lane.b32.xlu2 %v973_v23, %s1171_s26  ;;  %v1104_v16 = vld [vmem:[%s1452_s2] ss:$0 sm:$0xff] }
  0x23   : > { %419 = vmatpush.bf16.msra.mxu0 %v1042_v44  ;;  %759 = vmatpush.bf16.msra.mxu3 %v750_v9  ;;  %v1105_v62 = vld [vmem:[%s1457_s7] ss:$0 sm:$0xff] }
  0x24   : > { %682 = vmatpush.bf16.msra.mxu2 %v1056_v11 }
  0x25   : > { %562 = vmatpush.bf16.msra.mxu1 %v1053_v30 }
  0x26   : > { %1026 = vmatmul.msk.bf16.vlgmr.msra.gmra.mxu3 %vm617_vm3, %v1057_v10 }
  0x27   : > { %420 = vmatpush.bf16.msra.mxu0 %v1041_v46 }
  0x29   : > { %505 = vrot.lane.b32.xlu0 %v977_v28, %s1171_s26  ;;  %563 = vmatpush.bf16.msra.mxu1 %v1052_v31  ;;  %v1060_v31 = vld [vmem:[%s1356_s24 + $0x18] sm:$0xff]  ;;  %s899_s24 = sshll.u32 %s315_s22, 6 }
  0x2a   : > { %507 = vrot.lane.b32.xlu1 %v981_v29, %s1171_s26  ;;  %s1397_s25 = scalar_lea.vmem [#allocation2], %s899_s24  ;;  %s1061_s26 = sshll.u32 %s1240_s9, 6 }
  0x2b   : > { %421 = vmatpush.bf16.msra.mxu0 %v1040_v48  ;;  %s817_s12 = scalar_lea.hbm %s1458_s8, %s1061_s26  ;;  %s818_s13 = sshll.u32 %s1397_s25, 4  ;;  %s819_s13 = int_to_ptr.vmem [resolvable:$true] %s818_s13 }
  0x2c   : > { %s820_s18 = sshll.u32 %s817_s12, 4  ;;  %s806_s9 = scalar_lea.sflag [#allocation3], %s315_s22  ;;  %s821_s18 = int_to_ptr.hbm [resolvable:$true] %s820_s18 }
  0x2d   : > { %s1121_s19 = sshra.s32 %s821_s18, 4  ;;  %s1127_s26 = scalar_lea.hbm %s1458_s8, 128  ;;  %s1122_s19 = int_to_ptr.hbm [resolvable:$true] %s1121_s19 }
  0x2e   : > { %937 = vmatmul.msk.bf16.vlgmr.msra.gmra.mxu0 %vm397_vm2, %v908_v51  ;;  %s1123_s23 = scalar_lea.hbm %s1122_s19, 64  ;;  %p1128_p0 = scmp.lt.s32.totalorder %s1122_s19, %s1458_s8 }
  0x2f   : > { %p1124_p11 = scmp.ne.s32.totalorder %s1122_s19, %s1123_s23  ;;  %p1129_p1 = scmp.lt.s32.totalorder %s1127_s26, %s1123_s23 }
  0x31   : > { %p1125_p12 = pnand %p1124_p11, %p1257_p5  ;;  %p1130_p2 = por %p1129_p1, %p1128_p0 }
  0x33   : > { %p1126_p13 = pneg %p1125_p12 }
  0x35   : > { %p1131_p3 = pnand %p1130_p2, %p1126_p13 }
  0x36   : > { %1027 = vmatmul.msk.bf16.gmra.mxu3 %vm617_vm3, %v1058_v13 }
  0x3e   : > { %938 = vmatmul.msk.bf16.gmra.mxu0 %vm397_vm2, %v912_v57 }
  0x46   : > { %1028 = vmatmul.msk.bf16.gmra.mxu3 %vm617_vm3, %v1059_v17 }
  0x4e   : > { %939 = vmatmul.msk.bf16.gmra.mxu0 %vm397_vm2, %v916_v60 }
  0x56   : > { %1029 = vmatmul.msk.bf16.gmra.mxu3 %vm617_vm3, %v1060_v31 }
  0x5e   : > { %940 = vmatmul.msk.bf16.gmra.mxu0 %vm397_vm2, %v920_v63  ;;  %v1106_v63 = vld [vmem:[%s1454_s4] ss:$0 sm:$0xff] }
  0x74   : > { %v502_v40 = vpop.permute.xlu2 %501 }
  0x7c   : > { %v504_v45 = vpop.permute.xlu2 %503 }
  0x7d   : > { %v512_v47 = vsel %vm509_vm1, %v502_v40, %v504_v45 }
  0x8b   : > { %v494_v32 = vpop.permute.xlu0 %493 }
  0x8c   : > { %v498_v35 = vpop.permute.xlu1 %497 }
  0x93   : > { %v496_v33 = vpop.permute.xlu0 %495 }
  0x94   : > { %v510_v34 = vsel %vm509_vm1, %v494_v32, %v496_v33  ;;  %v500_v36 = vpop.permute.xlu1 %499 }
  0x95   : > { %998 = vmatmul.msk.bf16.vlgmr.msra.gmra.mxu1 %vm397_vm2, %v510_v34  ;;  %v511_v37 = vsel %vm509_vm1, %v498_v35, %v500_v36 }
  0x9b   : > { %v506_v53 = vpop.permute.xlu0 %505 }
  0x9c   : > { %v508_v52 = vpop.permute.xlu1 %507 }
  0x9d   : > { %v513_v54 = vsel %vm509_vm1, %v506_v53, %v508_v52 }
  0xa5   : > { %999 = vmatmul.msk.bf16.gmra.mxu1 %vm397_vm2, %v511_v37 }
  0xa9   : > { %v761_v60 = vpop.f32.mrf.mxu3 }
  0xab   : > { %v423_v12 = vpop.f32.mrf.mxu0 }
  0xb1   : > { %v763_v61 = vpop.f32.mrf.mxu3 }
  0xb3   : > { %v425_v14 = vpop.f32.mrf.mxu0 }
  0xb5   : > { %1000 = vmatmul.msk.bf16.gmra.mxu1 %vm397_vm2, %v512_v47 }
  0xbb   : > { %v428_v20 = vpop.f32.mrf.mxu0 }
  0xc3   : > { %v430_v29 = vpop.f32.mrf.mxu0 }
  0xc5   : > { %1001 = vmatmul.msk.bf16.gmra.mxu1 %vm397_vm2, %v513_v54 }
  0xcb   : > { %v433_v37 = vpop.f32.mrf.mxu0 }
  0xd3   : > { %v435_v41 = vpop.f32.mrf.mxu0 }
  0xdb   : > { %v438_v49 = vpop.f32.mrf.mxu0 }
  0xe3   : > { %v440_v53 = vpop.f32.mrf.mxu0 }
 0x112   : > { %v565_v0 = vpop.f32.mrf.mxu1 }
 0x113   : > { %593 = vrot.lane.b32.xlu2 %v565_v0, %s1172_s20  ;;  %v762_v0 = vadd.f32 %v1105_v62, %v761_v60 }
 0x11a   : > { %v567_v1 = vpop.f32.mrf.mxu1 }
 0x11b   : > { %595 = vrot.lane.b32.xlu0 %v567_v1, %s1172_s20 }
 0x122   : > { %v570_v2 = vpop.f32.mrf.mxu1 }
 0x123   : > { %597 = vrot.lane.b32.xlu1 %v570_v2, %s1172_s20 }
 0x12a   : > { %v572_v3 = vpop.f32.mrf.mxu1 }
 0x12b   : > { %599 = vrot.lane.b32.xlu2 %v572_v3, %s1172_s20 }
 0x132   : > { %v575_v4 = vpop.f32.mrf.mxu1 }
 0x133   : > { %601 = vrot.lane.b32.xlu0 %v575_v4, %s1172_s20  ;;  %v766_v4 = vpop.f32.mrf.mxu3 }
 0x13a   : > { %v577_v5 = vpop.f32.mrf.mxu1 }
 0x13b   : > { %603 = vrot.lane.b32.xlu1 %v577_v5, %s1172_s20  ;;  %v768_v11 = vpop.f32.mrf.mxu3 }
 0x142   : > { %v580_v6 = vpop.f32.mrf.mxu1 }
 0x143   : > { %605 = vrot.lane.b32.xlu2 %v580_v6, %s1172_s20 }
 0x14a   : > { %v582_v7 = vpop.f32.mrf.mxu1 }
 0x14b   : > { %607 = vrot.lane.b32.xlu0 %v582_v7, %s1172_s20  ;;  %v764_v7 = vadd.f32 %v1105_v62, %v763_v61 }
 0x16d   : > { %v594_v15 = vpop.permute.xlu2 %593 }
 0x16e   : > { %v618_v18 = vsel %vm617_vm3, %v423_v12, %v594_v15  ;;  %v767_v12 = vadd.f32 %v1105_v62, %v766_v4 }
 0x16f   : > { %v630_v19 = vadd.f32 %v1104_v16, %v618_v18  ;;  %v771_v18 = vpop.f32.mrf.mxu3 }
 0x171   : > { %v638_v24 = vmax.f32 %v630_v19, 0.0  ;;  %v769_v19 = vadd.f32 %v1105_v62, %v768_v11 }
 0x185   : > { %v600_v28 = vpop.permute.xlu2 %599 }
 0x186   : > { %v621_v32 = vsel %vm617_vm3, %v430_v29, %v600_v28 }
 0x187   : > { %v633_v34 = vadd.f32 %v1104_v16, %v621_v32 }
 0x189   : > { %v641_v36 = vmax.f32 %v633_v34, 0.0 }
 0x18d   : > { %v596_v21 = vpop.permute.xlu0 %595 }
 0x18e   : > { %v619_v22 = vsel %vm617_vm3, %v425_v14, %v596_v21 }
 0x18f   : > { %v631_v23 = vadd.f32 %v1104_v16, %v619_v22 }
 0x191   : > { %v639_v25 = vmax.f32 %v631_v23, 0.0  ;;  %v772_v23 = vadd.f32 %v1105_v62, %v771_v18 }
 0x193   : > { %v646_v26 = vpack.c.bf16 %v639_v25, %v638_v24 }
 0x195   : > { %v598_v27 = vpop.permute.xlu1 %597  ;;  %1006 = vmatmul.msk.bf16.vlgmr.msra.gmra.mxu2 %vm662_vm4, %v646_v26  ;;  %v773_v26 = vpop.f32.mrf.mxu3 }
 0x196   : > { %v620_v30 = vsel %vm617_vm3, %v428_v20, %v598_v27 }
 0x197   : > { %v632_v33 = vadd.f32 %v1104_v16, %v620_v30  ;;  %v774_v30 = vadd.f32 %v1105_v62, %v773_v26 }
 0x199   : > { %v640_v35 = vmax.f32 %v632_v33, 0.0 }
 0x19b   : > { %v647_v38 = vpack.c.bf16 %v641_v36, %v640_v35 }
 0x19d   : > { %v606_v50 = vpop.permute.xlu2 %605  ;;  %v776_v33 = vpop.f32.mrf.mxu3 }
 0x19e   : > { %v624_v51 = vsel %vm617_vm3, %v438_v49, %v606_v50  ;;  %v777_v35 = vadd.f32 %v1105_v62, %v776_v33 }
 0x19f   : > { %v636_v52 = vadd.f32 %v1104_v16, %v624_v51 }
 0x1a1   : > { %v644_v57 = vmax.f32 %v636_v52, 0.0 }
 0x1a5   : > { %1007 = vmatmul.msk.bf16.gmra.mxu2 %vm662_vm4, %v647_v38  ;;  %v602_v39 = vpop.permute.xlu0 %601 }
 0x1a6   : > { %v622_v40 = vsel %vm617_vm3, %v433_v37, %v602_v39 }
 0x1a7   : > { %v634_v42 = vadd.f32 %v1104_v16, %v622_v40  ;;  %v778_v40 = vpop.f32.mrf.mxu3 }
 0x1a9   : > { %v642_v46 = vmax.f32 %v634_v42, 0.0  ;;  %v779_v42 = vadd.f32 %v1105_v62, %v778_v40 }
 0x1ad   : > { %v604_v43 = vpop.permute.xlu1 %603 }
 0x1ae   : > { %v623_v44 = vsel %vm617_vm3, %v435_v41, %v604_v43 }
 0x1af   : > { %v635_v45 = vadd.f32 %v1104_v16, %v623_v44 }
 0x1b1   : > { %v643_v47 = vmax.f32 %v635_v45, 0.0 }
 0x1b3   : > { %v648_v48 = vpack.c.bf16 %v643_v47, %v642_v46 }
 0x1b5   : > { %1008 = vmatmul.msk.bf16.gmra.mxu2 %vm662_vm4, %v648_v48 }
 0x1bd   : > { %v608_v54 = vpop.permute.xlu0 %607 }
 0x1be   : > { %v625_v55 = vsel %vm617_vm3, %v440_v53, %v608_v54 }
 0x1bf   : > { %v637_v56 = vadd.f32 %v1104_v16, %v625_v55 }
 0x1c1   : > { %v645_v58 = vmax.f32 %v637_v56, 0.0 }
 0x1c3   : > { %v649_v59 = vpack.c.bf16 %v645_v58, %v644_v57 }
 0x1c5   : > { %1009 = vmatmul.msk.bf16.gmra.mxu2 %vm662_vm4, %v649_v59 }
 0x218   : > { %v684_v1 = vpop.f32.mrf.mxu2 }
 0x219   : > { %v685_v2 = vadd.f32 %v1106_v63, %v684_v1 }
 0x21b   : > { %v781_v3 = vadd.f32 %v762_v0, %v685_v2 }
 0x21d   : > { %v789_v5 = vmax.f32 %v781_v3, 0.0 }
 0x21f   : > { %797 = vst.msk [vmem:[%s1397_s25] sm:$0xff] %vm662_vm4, %v789_v5 }
 0x220   : > { %v686_v6 = vpop.f32.mrf.mxu2 }
 0x221   : > { %v687_v8 = vadd.f32 %v1106_v63, %v686_v6 }
 0x223   : > { %v782_v9 = vadd.f32 %v764_v7, %v687_v8 }
 0x225   : > { %v790_v10 = vmax.f32 %v782_v9, 0.0 }
 0x227   : > { %798 = vst.msk [vmem:[%s1397_s25 + $0x8] sm:$0xff] %vm662_vm4, %v790_v10 }
 0x228   : > { %v689_v13 = vpop.f32.mrf.mxu2 }
 0x229   : > { %v690_v14 = vadd.f32 %v1106_v63, %v689_v13 }
 0x22b   : > { %v783_v15 = vadd.f32 %v767_v12, %v690_v14 }
 0x22d   : > { %v791_v16 = vmax.f32 %v783_v15, 0.0 }
 0x22f   : > { %799 = vst.msk [vmem:[%s1397_s25 + $0x10] sm:$0xff] %vm662_vm4, %v791_v16 }
 0x230   : > { %v691_v17 = vpop.f32.mrf.mxu2 }
 0x231   : > { %v692_v20 = vadd.f32 %v1106_v63, %v691_v17 }
 0x233   : > { %v784_v21 = vadd.f32 %v769_v19, %v692_v20 }
 0x235   : > { %v792_v22 = vmax.f32 %v784_v21, 0.0 }
 0x237   : > { %800 = vst.msk [vmem:[%s1397_s25 + $0x18] sm:$0xff] %vm662_vm4, %v792_v22 }
 0x238   : > { %v694_v24 = vpop.f32.mrf.mxu2 }
 0x239   : > { %v695_v25 = vadd.f32 %v1106_v63, %v694_v24 }
 0x23b   : > { %v785_v27 = vadd.f32 %v772_v23, %v695_v25 }
 0x23d   : > { %v793_v28 = vmax.f32 %v785_v27, 0.0 }
 0x23f   : > { %801 = vst.msk [vmem:[%s1397_s25 + $0x20] sm:$0xff] %vm662_vm4, %v793_v28 }
 0x240   : > { %v696_v29 = vpop.f32.mrf.mxu2 }
 0x241   : > { %v697_v31 = vadd.f32 %v1106_v63, %v696_v29 }
 0x243   : > { %v786_v32 = vadd.f32 %v774_v30, %v697_v31 }
 0x245   : > { %v794_v34 = vmax.f32 %v786_v32, 0.0 }
 0x247   : > { %802 = vst.msk [vmem:[%s1397_s25 + $0x28] sm:$0xff] %vm662_vm4, %v794_v34 }
 0x248   : > { %v699_v36 = vpop.f32.mrf.mxu2 }
 0x249   : > { %v700_v37 = vadd.f32 %v1106_v63, %v699_v36 }
 0x24b   : > { %v787_v38 = vadd.f32 %v777_v35, %v700_v37 }
 0x24d   : > { %v795_v39 = vmax.f32 %v787_v38, 0.0 }
 0x24f   : > { %803 = vst.msk [vmem:[%s1397_s25 + $0x30] sm:$0xff] %vm662_vm4, %v795_v39 }
 0x250   : > { %v701_v41 = vpop.f32.mrf.mxu2 }
 0x251   : > { %v702_v43 = vadd.f32 %v1106_v63, %v701_v41 }
 0x253   : > { %v788_v44 = vadd.f32 %v779_v42, %v702_v43 }
 0x255   : > { %v796_v45 = vmax.f32 %v788_v44, 0.0 }
 0x257   : > { %804 = vst.msk [vmem:[%s1397_s25 + $0x38] sm:$0xff] %vm662_vm4, %v796_v45 }
 0x258   : > { %1134 = shalt.err (!%p1131_p3)
}
 0x259   : > { %s1173_s22 = smov 128  }
 0x25a   : > { %1062 = dma.vmem_to_hbm [thread:$0]  (%p1257_p5), %s819_s13, 1024, %s821_s18, %s806_s9, %s1173_s22, %s1173_s22, %s1172_s20  }
 0x25b PF: > { %p1068_p4 = scmp.ge.s32.totalorder %s1169_s30, 2  ;;  %s835_s25 = sand.u32 1, %s1157_s27  }
 0x25c   : > { %s836_s12 = scalar_lea.sflag [#allocation3], %s835_s25 }
 0x25d   : > { %p1065_p7 = pnand %p1068_p4, %p1261_p6 }
 0x25f   : > { %p1066_p8 = pneg %p1065_p7 }
 0x261   : > { %1152 = dma.done.wait (%p1066_p8), %s836_s12, 1024  }
 0x262   : > { %1154 = vsyncadd (%p1066_p8), %s836_s12, 4294966272  ;;  %p18_p9 = scmp.ge.s32.totalorder %s1244_s11, 4   ;;  %s1461_s27 = smov %s1161_s28 }
 0x263   : > { %s1462_s28 = smov %s1165_s29  ;;  %s1463_s29 = smov %s1255_s14 }
 0x264   : > { %s1464_s30 = smov %s1244_s11  ;;  %20 = sbr.rel (!%p18_p9) target bundleno = 3 (0x3), region = 91 }
 0x269   :  { %842 = vsyncpa [#allocation3], 1 }
 0x26a   :  { %844 = vsyncpa [#allocation3 + $0x1], 1 }

</bundles_post_ra>
